<compile_context>
chip_gen: v6e
topology: v6e:2x2x1
jax: 0.10.0
libtpu: 0.0.40
codegen_flags: <defaults>
</compile_context>

<pallas_src>
import math

import jax
import jax.numpy as jnp
from jax.experimental import pallas as pl
from jax.experimental.pallas import tpu as pltpu

_LANE = 128
_SUBLANE = 8
_SMALL_CUTOFF_BYTES = 1 << 20  # below this, plain XLA multiply is strictly better


def _initial_mask(key, shape):
    """JAX equivalent of `initial`: ones + 0.08 * kaiming_normal_(shape).

    PyTorch kaiming_normal_ (default fan_in, a=0 -> gain=sqrt(2)):
      std = sqrt(2 / fan_in), fan_in = shape[1] * prod(shape[2:]) for ndim>2.
    Deterministic via the provided PRNG key (not bit-identical to torch RNG).
    """
    if len(shape) > 2:
        fan_in = shape[1] * int(math.prod(shape[2:]))
    elif len(shape) == 2:
        fan_in = shape[1]
    else:
        fan_in = shape[0]
    std = math.sqrt(2.0 / fan_in)
    return jnp.ones(shape, jnp.float32) + 0.08 * std * jax.random.normal(
        key, shape, jnp.float32
    )


def _tile_bytes_target():
    """Per-tile byte budget tuned per TPU generation."""
    try:
        kind = jax.devices()[0].device_kind.lower()
    except Exception:  # pragma: no cover - defensive
        return 2 << 20
    if ("v6" in kind) or ("v7" in kind) or ("tpu7" in kind):
        # Fast HBM (1.4-3.2 TB/s): bigger tiles amortize the ~0.35us/step cost.
        return 4 << 20
    # v5e (and older / unknown): stay friendly to the 16 MiB scoped default.
    return 2 << 20


def _choose_tiles(n_rows, n_cols, itemsize, tile_bytes):
    """Fixed tile sizes obeying the (8, 128) rule; cdiv grid handles edges."""
    # Lane tile: as wide as the array allows (lane-dense output => unmasked
    # vst), capped so that 8 sublanes still fit the byte budget.
    lane_cap = max(_LANE, (tile_bytes // (_SUBLANE * itemsize)) // _LANE * _LANE)
    if n_cols <= _LANE:
        lane_tile = n_cols  # full extent (allowed even if < 128)
    elif n_cols % _LANE == 0:
        lane_tile = min(n_cols, lane_cap)
    else:
        lane_tile = min((n_cols // _LANE) * _LANE, lane_cap)

    # Row tile: fill the remaining byte budget with sublanes.
    if n_rows <= _SUBLANE:
        row_tile = n_rows  # full extent
    else:
        budget_rows = max(_SUBLANE, tile_bytes // (lane_tile * itemsize))
        row_tile = (budget_rows // _SUBLANE) * _SUBLANE
        row_cap = (n_rows // _SUBLANE) * _SUBLANE
        row_tile = max(_SUBLANE, min(row_tile, row_cap))
    return row_tile, lane_tile


def _mask_mul_kernel(x_ref, m_ref, o_ref):
    # x_ref: (row_tile, lane_tile) rows of the flattened (N, C*H*W) input.
    # m_ref: (1, lane_tile) slice of the flattened mask (broadcast over rows).
    o_ref[...] = x_ref[...] * m_ref[...]


def dense_mask_block_2d(x, mask, *, min_pallas_bytes=_SMALL_CUTOFF_BYTES,
                        tile_bytes=None, donate_x=False):
    """forward(out) = out * mask  (mask broadcast over batch).

    x:    (N, C, H, W)  float32
    mask: (C, H, W)     float32
    """
    N, C, H, W = x.shape
    assert mask.shape == (C, H, W)
    CHW = C * H * W
    itemsize = jnp.dtype(x.dtype).itemsize
    total_bytes = N * CHW * itemsize

    # Tiny tensors: custom-call + grid-step overhead dominates; let XLA fuse
    # the broadcast multiply instead.
    if total_bytes < min_pallas_bytes:
        return x * mask[None, :, :, :]

    # Lane-dense 2D views: rows = batch, lanes = all of C*H*W.
    x2 = x.reshape(N, CHW)
    m2 = mask.reshape(1, CHW)

    if tile_bytes is None:
        tile_bytes = _tile_bytes_target()
    row_tile, lane_tile = _choose_tiles(N, CHW, itemsize, tile_bytes)
    n_row_blocks = pl.cdiv(N, row_tile)
    n_lane_blocks = pl.cdiv(CHW, lane_tile)

    if n_lane_blocks > 1:
        # Lane axis outermost: mask block index is constant across the inner
        # row loop, so the mask tile stays VMEM-resident (re-DMA'd only
        # n_lane_blocks times total). Outer axis also has >=2 steps, so v7x's
        # two TensorCores both get work.
        grid = (n_lane_blocks, n_row_blocks)
        x_map = lambda j, i: (i, j)
        m_map = lambda j, i: (0, j)
    else:
        # Single lane block: put the row axis outermost so a length-1 outer
        # axis never starves one of v7x's TensorCores. Mask index stays (0, 0).
        grid = (n_row_blocks, n_lane_blocks)
        x_map = lambda i, j: (i, j)
        m_map = lambda i, j: (0, j)

    # Explicit VMEM budget: double-buffered x + out tiles, double-buffered
    # mask tile (1 row pads to 8 sublanes), plus headroom.
    x_tile_b = row_tile * lane_tile * itemsize
    m_tile_b = _SUBLANE * lane_tile * itemsize
    needed = 4 * x_tile_b + 2 * m_tile_b + (2 << 20)
    vmem_limit = int(min(48 << 20, max(needed, 16 << 20)))

    out = pl.pallas_call(
        _mask_mul_kernel,
        out_shape=jax.ShapeDtypeStruct((N, CHW), x.dtype),
        grid_spec=pltpu.PrefetchScalarGridSpec(
            num_scalar_prefetch=0,
            grid=grid,
            in_specs=[
                pl.BlockSpec((row_tile, lane_tile), x_map),
                pl.BlockSpec((1, lane_tile), m_map),
            ],
            out_specs=pl.BlockSpec((row_tile, lane_tile), x_map),
        ),
        compiler_params=pltpu.CompilerParams(
            dimension_semantics=("parallel", "parallel"),
            vmem_limit_bytes=vmem_limit,
        ),
        # Drops the extra N*CHW output allocation when the caller donates x.
        input_output_aliases=({0: 0} if donate_x else {}),
    )(x2, m2)

    return out.reshape(N, C, H, W)


if __name__ == "__main__":
    key = jax.random.PRNGKey(0)
    k_mask, k_x, k_mask2, k_x2 = jax.random.split(key, 4)

    # 1) Module-sized demo (tiny): default path short-circuits to XLA multiply.
    N, C, H, W = 2, 4, 16, 16
    mask = _initial_mask(k_mask, (C, H, W))
    x = jax.random.normal(k_x, (N, C, H, W), jnp.float32)
    y = jax.block_until_ready(dense_mask_block_2d(x, mask))
    assert y.shape == (N, C, H, W)
    assert jnp.allclose(y, x * mask[None], atol=1e-6, rtol=1e-6)

    # 2) Force the Pallas path on the same tiny shape (single-block grid).
    y_p = jax.block_until_ready(dense_mask_block_2d(x, mask, min_pallas_bytes=0))
    assert jnp.allclose(y_p, x * mask[None], atol=1e-6, rtol=1e-6)

    # 3) Awkward shape + tiny tile budget: exercises the cdiv grid with partial
    #    edge blocks in both the row and lane dims and a multi-step grid.
    N2, C2, H2, W2 = 10, 3, 20, 20  # CHW = 1200 (not a multiple of 128), N = 10
    mask2 = _initial_mask(k_mask2, (C2, H2, W2))
    x2 = jax.random.normal(k_x2, (N2, C2, H2, W2), jnp.float32)
    y2 = jax.block_until_ready(
        dense_mask_block_2d(x2, mask2, min_pallas_bytes=0, tile_bytes=64 * 1024)
    )
    assert jnp.allclose(y2, x2 * mask2[None], atol=1e-6, rtol=1e-6)

    print("KERNEL_OK")
</pallas_src>

<mosaic_0001>
module attributes {stable_mosaic.version = 11 : i64} {
  func.func @_mask_mul_kernel(%arg0: i32, %arg1: i32, %arg2: memref<2x1024xf32, #tpu.memory_space<vmem>>, %arg3: memref<1x1024xf32, #tpu.memory_space<vmem>>, %arg4: memref<2x1024xf32, #tpu.memory_space<vmem>>) attributes {dimension_semantics = [#tpu.dimension_semantics<parallel>, #tpu.dimension_semantics<parallel>], iteration_bounds = array<i64: 1, 1>, scalar_prefetch = 0 : i64, scratch_operands = 0 : i64, tpu.core_type = #tpu.core_type<tc>, window_params = [{transform_indices = @transform_0, window_bounds = array<i64: 2, 1024>}, {transform_indices = @transform_1, window_bounds = array<i64: 1, 1024>}, {transform_indices = @transform_2, window_bounds = array<i64: 2, 1024>}]} {
    %c0 = arith.constant 0 : index
    %c0_0 = arith.constant 0 : index
    %0 = vector.load %arg2[%c0, %c0_0] : memref<2x1024xf32, #tpu.memory_space<vmem>>, vector<2x1024xf32>
    %c0_1 = arith.constant 0 : index
    %c0_2 = arith.constant 0 : index
    %1 = vector.load %arg3[%c0_1, %c0_2] : memref<1x1024xf32, #tpu.memory_space<vmem>>, vector<1x1024xf32>
    %2 = vector.broadcast %1 : vector<1x1024xf32> to vector<2x1024xf32>
    %3 = arith.mulf %0, %2 : vector<2x1024xf32>
    %c0_3 = arith.constant 0 : index
    %c0_4 = arith.constant 0 : index
    %4 = vector.load %arg4[%c0_3, %c0_4] : memref<2x1024xf32, #tpu.memory_space<vmem>>, vector<2x1024xf32>
    tpu.vector_store %arg4[%c0_3, %c0_4], %3 {strides = array<i32>} : memref<2x1024xf32, #tpu.memory_space<vmem>>, vector<2x1024xf32>,
    return
  }
  func.func @transform_0(%arg0: i32, %arg1: i32) -> (i32, i32) {
    %c0_i32 = arith.constant 0 : i32
    return %arg0, %arg1 : i32, i32
  }
  func.func @transform_1(%arg0: i32, %arg1: i32) -> (i32, i32) {
    %c0_i32 = arith.constant 0 : i32
    %c0_i32_0 = arith.constant 0 : i32
    return %c0_i32, %arg1 : i32, i32
  }
  func.func @transform_2(%arg0: i32, %arg1: i32) -> (i32, i32) {
    %c0_i32 = arith.constant 0 : i32
    return %arg0, %arg1 : i32, i32
  }
}

</mosaic_0001>

<bundles_post_ra>
// kernel: tpu_custom_call.1
= control target key start
LH: loop header
LB: loop body
LE: loop exit
PB: predicated region body
PF: predicated region fallthrough
CT: control target
= control target key end

     0   :  { %7 = vsyncpa [#allocation3], 0  ;;  %s226_s0 = inlined_call_operand.hbm [shape: f32[2,1024], index: 0, kind: input, shape index: {}]   ;;  %s227_s1 = inlined_call_operand.hbm [shape: f32[1,1024], index: 1, kind: input, shape index: {}]   ;;  %s228_s2 = inlined_call_operand.hbm [shape: f32[2,1024], index: 2, kind: output, shape index: {}]  }
   0x1   :  { %8 = vsyncpa [#allocation6], 0 }
   0x2   :  { %9 = vsyncpa [#allocation4], 0  ;;  %s198_s9 = smov [#allocation2]   ;;  %s199_s11 = smov [#allocation5]  }
   0x3   :  { %s16_s10 = sshll.u32 %s198_s9, 4  ;;  %s26_s12 = sshll.u32 %s199_s11, 4  ;;  %s17_s10 = int_to_ptr.vmem [resolvable:$true] %s16_s10  ;;  %s27_s12 = int_to_ptr.vmem [resolvable:$true] %s26_s12 }
   0x4   :  { %s140_s13 = scalar_lea.vmem %s17_s10, 256  ;;  %p145_p1 = scmp.lt.s32.totalorder %s17_s10, %s17_s10 }
   0x5   :  { %p141_p0 = scmp.ne.s32.totalorder %s17_s10, %s140_s13  ;;  %p146_p2 = scmp.lt.s32.totalorder %s140_s13, %s140_s13 }
   0x7   :  { %p147_p3 = por %p146_p2, %p145_p1 }
   0x9   :  { %p148_p4 = pnand %p147_p3, %p141_p0 }
   0xb   :  { %151 = shalt.err (!%p148_p4)
}
   0xc   :  { %19 = dma.hbm_to_vmem [thread:$0]  %s226_s0, 256, %s17_s10, [#allocation3]  }
   0xd   :  { %s160_s16 = scalar_lea.vmem %s27_s12, 128  ;;  %p165_p6 = scmp.lt.s32.totalorder %s27_s12, %s27_s12 }
   0xe   :  { %p161_p5 = scmp.ne.s32.totalorder %s27_s12, %s160_s16  ;;  %p166_p7 = scmp.lt.s32.totalorder %s160_s16, %s160_s16 }
  0x10   :  { %p167_p8 = por %p166_p7, %p165_p6 }
  0x12   :  { %p168_p9 = pnand %p167_p8, %p161_p5 }
  0x14   :  { %171 = shalt.err (!%p168_p9)
}
  0x15   :  { %29 = dma.hbm_to_vmem [thread:$0]  %s227_s1, 128, %s27_s12, [#allocation6]  }
  0x16   :  { %192 = dma.done.wait [#allocation3], 256  }
  0x17   :  { %193 = vsyncadd [#allocation3], 4294967040 }
  0x18   :  { %194 = dma.done.wait [#allocation6], 128  }
  0x19   :  { %195 = vsyncadd [#allocation6], 4294967168  ;;  %v40_v0 = vlaneseq  ;;  %v200_v1 = vmov 1983009808   ;;  %v38_v13 = vld [vmem:[#allocation5] sm:$0xff]  ;;  %v36_v29 = vld [vmem:[#allocation2] sm:$0xff] }
  0x1a   :  { %v75_v2 = vunpack.c.l.s4 %v200_v1  ;;  %v37_v33 = vld [vmem:[#allocation2 + $0x8] sm:$0xff]  ;;  %s201_s0 = smov [#allocation7]  }
  0x1b   :  { %v41_v3 = vshrl.u32 %v40_v0, 7  ;;  %s118_s1 = sshll.u32 %s201_s0, 4  ;;  %s119_s1 = int_to_ptr.vmem [resolvable:$true] %s118_s1 }
  0x1c   :  { %v76_v4 = vunpack.c.0.s8 %v75_v2  ;;  %s172_s19 = scalar_lea.vmem %s119_s1, 256  ;;  %p177_p11 = scmp.lt.s32.totalorder %s119_s1, %s119_s1 }
  0x1d   :  { %v42_v5 = vsub.s32 0, %v41_v3  ;;  %v46_v6 = vsub.s32 1, %v41_v3  ;;  %v50_v7 = vsub.s32 2, %v41_v3  ;;  %v54_v8 = vsub.s32 3, %v41_v3  ;;  %p173_p10 = scmp.ne.s32.totalorder %s119_s1, %s172_s19  ;;  %p178_p12 = scmp.lt.s32.totalorder %s172_s19, %s172_s19 }
  0x1e   :  { %v58_v9 = vsub.s32 4, %v41_v3  ;;  %v62_v10 = vsub.s32 5, %v41_v3  ;;  %v66_v11 = vsub.s32 6, %v41_v3  ;;  %v70_v12 = vsub.s32 7, %v41_v3 }
  0x1f   :  { %v79_v14 = vsub.s32 %v76_v4, %v41_v3  ;;  %v43_v15 = vrot.slane %v38_v13, %v42_v5  ;;  %v47_v16 = vrot.slane %v38_v13, %v46_v6  ;;  %v51_v17 = vrot.slane %v38_v13, %v50_v7  ;;  %p179_p13 = por %p178_p12, %p177_p11 }
  0x20   :  { %v55_v18 = vrot.slane %v38_v13, %v54_v8  ;;  %v59_v19 = vrot.slane %v38_v13, %v58_v9  ;;  %v63_v20 = vrot.slane %v38_v13, %v62_v10  ;;  %v67_v21 = vrot.slane %v38_v13, %v66_v11 }
  0x21   :  { %v71_v22 = vrot.slane %v38_v13, %v70_v12  ;;  %v72_v23 = vcombine.low %v43_v15, %v47_v16  ;;  %p180_p0 = pnand %p179_p13, %p173_p10 }
  0x22   :  { %v73_v24 = vcombine.low %v51_v17, %v55_v18  ;;  %v89_v25 = vcombine.low %v59_v19, %v63_v20 }
  0x23   :  { %v90_v26 = vcombine.low %v67_v21, %v71_v22  ;;  %v80_v27 = vrot.slane %v72_v23, %v79_v14 }
  0x24   :  { %v87_v28 = vrot.slane %v73_v24, %v79_v14  ;;  %v97_v30 = vrot.slane %v89_v25, %v79_v14 }
  0x25   :  { %v104_v31 = vrot.slane %v90_v26, %v79_v14 }
  0x26   :  { %v88_v32 = vcombine.low %v80_v27, %v87_v28 }
  0x27   :  { %v105_v34 = vcombine.low %v97_v30, %v104_v31 }
  0x28   :  { %v108_v35 = vmul.f32 %v88_v32, %v36_v29 }
  0x29   :  { %v109_v36 = vmul.f32 %v105_v34, %v37_v33 }
  0x2a   :  { %110 = vst [vmem:[#allocation7] sm:$0xff] %v108_v35 }
  0x2b   :  { %111 = vst [vmem:[#allocation7 + $0x8] sm:$0xff] %v109_v36 }
  0x2c   :  { %183 = shalt.err (!%p180_p0)
}
  0x2d   :  { %121 = dma.vmem_to_hbm [thread:$0]  %s119_s1, 256, %s228_s2, [#allocation4]  }
  0x2e   :  { %196 = dma.done.wait [#allocation4], 256  }
  0x2f   :  { %197 = vsyncadd [#allocation4], 4294967040 }
  0x30   :  { %125 = vsyncpa [#allocation3], 1 }
  0x31   :  { %126 = vsyncpa [#allocation6], 1 }
  0x32   :  { %127 = vsyncpa [#allocation4], 1 }

</bundles_post_ra>
